<compile_context>
chip_gen: v7x
topology: tpu7x:2x2x1
jax: 0.10.0
libtpu: 0.0.40
codegen_flags: <defaults>
</compile_context>

<pallas_src>
import jax
import jax.numpy as jnp
from jax import lax
from jax.experimental import pallas as pl
from jax.experimental.pallas import tpu as pltpu


def _rnn_recurrence_kernel(x_ref, wih_ref, whh_ref, b_ref, h_out_ref, xproj_scratch):
    # x_ref:         (T, B, I)  time-major input
    # wih_ref:       (I, H)     W_ih^T
    # whh_ref:       (H, H)     W_hh^T
    # b_ref:         (1, H)     b_ih + b_hh (pre-folded)
    # h_out_ref:     (B, H)     final hidden state
    # xproj_scratch: (T, B, H)  VMEM scratch for the hoisted input projection
    T, B, I = x_ref.shape
    H = h_out_ref.shape[1]

    # --- prologue: input projection hoisted off the serial path, bias folded once.
    if I == 1:
        # VPU broadcast multiply: (T,B,1) * (1,H) + (1,H) -> (T,B,H).
        # Avoids a K=1 MXU matmul (full fill/drain latency) on the critical path.
        xproj_scratch[...] = x_ref[...] * wih_ref[...] + b_ref[...]
    else:
        # General case: one batched MXU contraction over I.
        xproj_scratch[...] = (
            lax.dot_general(
                x_ref[...],
                wih_ref[...],
                dimension_numbers=(((2,), (0,)), ((), ())),
                preferred_element_type=jnp.float32,
            )
            + b_ref[...]
        )

    # Load W_hh^T once; it stays in vregs across the unrolled loop.
    whh = whh_ref[...]

    # --- serial recurrence: h_t = tanh(x_proj[t] + h_{t-1} @ W_hh^T)
    def body(t, h):
        xp = xproj_scratch[t]  # (B, H): leading-dim index -> sublane-aligned tile load
        return jnp.tanh(xp + jnp.dot(h, whh, preferred_element_type=jnp.float32))

    h0 = jnp.zeros((B, H), jnp.float32)
    # T=8 static -> fully unrolled; cap the unroll factor if T ever grows large.
    h_out_ref[...] = lax.fori_loop(0, T, body, h0, unroll=True)


def prepare_params(params):
    """One-time (init-time) weight prep: transposes + folded RNN bias.

    Keeps per-call wrapper glue to a minimum (no per-call weight transposes).
    """
    H = params["w_ih"].shape[0]
    return {
        "wih_t": jnp.transpose(params["w_ih"], (1, 0)).astype(jnp.float32),  # (I, H)
        "whh_t": jnp.transpose(params["w_hh"], (1, 0)).astype(jnp.float32),  # (H, H)
        "b": (params["b_ih"] + params["b_hh"]).reshape(1, H).astype(jnp.float32),
        "wfc_t": jnp.transpose(params["w_fc"], (1, 0)).astype(jnp.float32),  # (H, 1)
        "b_fc": params["b_fc"].astype(jnp.float32),                          # (1,)
    }


@jax.jit
def rnn_predictor_forward(x, prep):
    """x: (B, T, I) float32 (PyTorch batch_first). Returns squeezed fc output."""
    B, T, I = x.shape
    H = prep["whh_t"].shape[0]

    # Time-major view for the kernel (single fused dispatch under jit).
    x_tm = jnp.transpose(x, (1, 0, 2)).astype(jnp.float32)  # (T, B, I)

    h_final = pl.pallas_call(
        _rnn_recurrence_kernel,
        out_shape=jax.ShapeDtypeStruct((B, H), jnp.float32),
        grid_spec=pltpu.PrefetchScalarGridSpec(
            num_scalar_prefetch=0,
            grid=(1,),  # single grid step; recurrence handled inside the kernel
            in_specs=[
                pl.BlockSpec((T, B, I), lambda i: (0, 0, 0)),  # whole x resident
                pl.BlockSpec((I, H), lambda i: (0, 0)),
                pl.BlockSpec((H, H), lambda i: (0, 0)),
                pl.BlockSpec((1, H), lambda i: (0, 0)),
            ],
            out_specs=pl.BlockSpec((B, H), lambda i: (0, 0)),
            scratch_shapes=[pltpu.VMEM((T, B, H), jnp.float32)],
            # NOTE: with grid=(1,) double-buffering the resident inputs is
            # wasted VMEM at large T*B; pipeline_mode=pl.Buffered(1) on the
            # in_specs is the knob to flip when scaling this up.
        ),
        compiler_params=pltpu.CompilerParams(
            dimension_semantics=("arbitrary",),
        ),
    )(x_tm, prep["wih_t"], prep["whh_t"], prep["b"])

    # fc head (H -> 1) on the final hidden state: fuses into the same jit
    # dispatch, keeps the kernel output lane-dense (no width-1 masked stores).
    out = h_final @ prep["wfc_t"] + prep["b_fc"]  # (B, 1)

    # NOTE: jnp.squeeze matches torch .squeeze(); with B == 1 this also drops
    # the batch dim (same behavior as the PyTorch module).
    return jnp.squeeze(out)


def init_params(key, input_size=1, hidden_size=32):
    # Deterministic init mirroring PyTorch's uniform(-1/sqrt(H), 1/sqrt(H)).
    # (dropout=0.2 in the module is a no-op with num_layers=1.)
    k = 1.0 / jnp.sqrt(jnp.float32(hidden_size))
    keys = jax.random.split(key, 6)
    u = lambda kk, shape: jax.random.uniform(
        kk, shape, dtype=jnp.float32, minval=-k, maxval=k
    )
    return {
        "w_ih": u(keys[0], (hidden_size, input_size)),
        "w_hh": u(keys[1], (hidden_size, hidden_size)),
        "b_ih": u(keys[2], (hidden_size,)),
        "b_hh": u(keys[3], (hidden_size,)),
        "w_fc": u(keys[4], (1, hidden_size)),
        "b_fc": u(keys[5], (1,)),
    }


def _reference_forward(x, params):
    """Pure-JAX reference of nn.RNN(tanh) + Linear on last step."""
    B, T, I = x.shape
    H = params["w_ih"].shape[0]
    h = jnp.zeros((B, H), jnp.float32)
    for t in range(T):
        h = jnp.tanh(
            x[:, t, :] @ params["w_ih"].T
            + params["b_ih"]
            + h @ params["w_hh"].T
            + params["b_hh"]
        )
    out = h @ params["w_fc"].T + params["b_fc"]
    return jnp.squeeze(out)


if __name__ == "__main__":
    B, T, I, H = 2, 8, 1, 32

    key = jax.random.PRNGKey(0)
    kx, kp = jax.random.split(key)
    x = jax.random.normal(kx, (B, T, I), dtype=jnp.float32)
    params = init_params(kp, input_size=I, hidden_size=H)
    prep = prepare_params(params)

    out = jax.block_until_ready(rnn_predictor_forward(x, prep))

    ref = jax.block_until_ready(_reference_forward(x, params))
    assert out.shape == (B,), out.shape
    assert jnp.allclose(out, ref, atol=1e-5, rtol=1e-5), (out, ref)

    print("KERNEL_OK")
</pallas_src>

<mosaic_0001>
module attributes {stable_mosaic.version = 11 : i64} {
  func.func @_rnn_recurrence_kernel(%arg0: i32, %arg1: memref<8x2x1xf32, #tpu.memory_space<vmem>>, %arg2: memref<1x32xf32, #tpu.memory_space<vmem>>, %arg3: memref<32x32xf32, #tpu.memory_space<vmem>>, %arg4: memref<1x32xf32, #tpu.memory_space<vmem>>, %arg5: memref<2x32xf32, #tpu.memory_space<vmem>>, %arg6: memref<8x2x32xf32, #tpu.memory_space<vmem>>) attributes {dimension_semantics = [#tpu.dimension_semantics<arbitrary>], iteration_bounds = array<i64: 1>, scalar_prefetch = 0 : i64, scratch_operands = 1 : i64, tpu.core_type = #tpu.core_type<tc>, window_params = [{pipeline_mode = #tpu.pipeline_mode<synchronous>, transform_indices = @transform_0, window_bounds = array<i64: 8, 2, 1>}, {pipeline_mode = #tpu.pipeline_mode<synchronous>, transform_indices = @transform_1, window_bounds = array<i64: 1, 32>}, {pipeline_mode = #tpu.pipeline_mode<synchronous>, transform_indices = @transform_2, window_bounds = array<i64: 32, 32>}, {pipeline_mode = #tpu.pipeline_mode<synchronous>, transform_indices = @transform_3, window_bounds = array<i64: 1, 32>}, {pipeline_mode = #tpu.pipeline_mode<synchronous>, transform_indices = @transform_4, window_bounds = array<i64: 2, 32>}]} {
    %c0 = arith.constant 0 : index
    %c0_0 = arith.constant 0 : index
    %c0_1 = arith.constant 0 : index
    %0 = vector.load %arg1[%c0, %c0_0, %c0_1] : memref<8x2x1xf32, #tpu.memory_space<vmem>>, vector<8x2x1xf32>
    %c0_2 = arith.constant 0 : index
    %c0_3 = arith.constant 0 : index
    %1 = vector.load %arg2[%c0_2, %c0_3] : memref<1x32xf32, #tpu.memory_space<vmem>>, vector<1x32xf32>
    %2 = vector.shape_cast %1 : vector<1x32xf32> to vector<1x1x32xf32>
    %3 = vector.broadcast %0 : vector<8x2x1xf32> to vector<8x2x32xf32>
    %4 = vector.broadcast %2 : vector<1x1x32xf32> to vector<8x2x32xf32>
    %5 = arith.mulf %3, %4 : vector<8x2x32xf32>
    %c0_4 = arith.constant 0 : index
    %c0_5 = arith.constant 0 : index
    %6 = vector.load %arg4[%c0_4, %c0_5] : memref<1x32xf32, #tpu.memory_space<vmem>>, vector<1x32xf32>
    %7 = vector.shape_cast %6 : vector<1x32xf32> to vector<1x1x32xf32>
    %8 = vector.broadcast %7 : vector<1x1x32xf32> to vector<8x2x32xf32>
    %9 = arith.addf %5, %8 : vector<8x2x32xf32>
    %c0_6 = arith.constant 0 : index
    %c0_7 = arith.constant 0 : index
    %c0_8 = arith.constant 0 : index
    %10 = vector.load %arg6[%c0_6, %c0_7, %c0_8] : memref<8x2x32xf32, #tpu.memory_space<vmem>>, vector<8x2x32xf32>
    tpu.vector_store %arg6[%c0_6, %c0_7, %c0_8], %9 {strides = array<i32>} : memref<8x2x32xf32, #tpu.memory_space<vmem>>, vector<8x2x32xf32>,
    %c0_9 = arith.constant 0 : index
    %c0_10 = arith.constant 0 : index
    %11 = vector.load %arg3[%c0_9, %c0_10] : memref<32x32xf32, #tpu.memory_space<vmem>>, vector<32x32xf32>
    %cst = arith.constant 0.000000e+00 : f32
    %12 = vector.broadcast %cst : f32 to vector<2x32xf32>
    %c0_i32 = arith.constant 0 : i32
    %13 = arith.index_cast %c0_i32 : i32 to index
    %c0_11 = arith.constant 0 : index
    %c0_12 = arith.constant 0 : index
    %14 = vector.load %arg6[%13, %c0_11, %c0_12] : memref<8x2x32xf32, #tpu.memory_space<vmem>>, vector<1x2x32xf32>
    %15 = vector.shape_cast %14 : vector<1x2x32xf32> to vector<2x32xf32>
    %cst_13 = arith.constant dense<0.000000e+00> : vector<2x32xf32>
    %16 = tpu.matmul %12, %11, %cst_13 {dimension_numbers = #tpu.dot_dimension_numbers<[1], [0], [0], [1], [0, 0, 1, 1], [], []>} : vector<2x32xf32>, vector<32x32xf32>, vector<2x32xf32> -> vector<2x32xf32>
    %17 = arith.addf %15, %16 : vector<2x32xf32>
    %18 = math.tanh %17 : vector<2x32xf32>
    %c1_i32 = arith.constant 1 : i32
    %19 = arith.index_cast %c1_i32 : i32 to index
    %c0_14 = arith.constant 0 : index
    %c0_15 = arith.constant 0 : index
    %20 = vector.load %arg6[%19, %c0_14, %c0_15] : memref<8x2x32xf32, #tpu.memory_space<vmem>>, vector<1x2x32xf32>
    %21 = vector.shape_cast %20 : vector<1x2x32xf32> to vector<2x32xf32>
    %cst_16 = arith.constant dense<0.000000e+00> : vector<2x32xf32>
    %22 = tpu.matmul %18, %11, %cst_16 {dimension_numbers = #tpu.dot_dimension_numbers<[1], [0], [0], [1], [0, 0, 1, 1], [], []>} : vector<2x32xf32>, vector<32x32xf32>, vector<2x32xf32> -> vector<2x32xf32>
    %23 = arith.addf %21, %22 : vector<2x32xf32>
    %24 = math.tanh %23 : vector<2x32xf32>
    %c2_i32 = arith.constant 2 : i32
    %25 = arith.index_cast %c2_i32 : i32 to index
    %c0_17 = arith.constant 0 : index
    %c0_18 = arith.constant 0 : index
    %26 = vector.load %arg6[%25, %c0_17, %c0_18] : memref<8x2x32xf32, #tpu.memory_space<vmem>>, vector<1x2x32xf32>
    %27 = vector.shape_cast %26 : vector<1x2x32xf32> to vector<2x32xf32>
    %cst_19 = arith.constant dense<0.000000e+00> : vector<2x32xf32>
    %28 = tpu.matmul %24, %11, %cst_19 {dimension_numbers = #tpu.dot_dimension_numbers<[1], [0], [0], [1], [0, 0, 1, 1], [], []>} : vector<2x32xf32>, vector<32x32xf32>, vector<2x32xf32> -> vector<2x32xf32>
    %29 = arith.addf %27, %28 : vector<2x32xf32>
    %30 = math.tanh %29 : vector<2x32xf32>
    %c3_i32 = arith.constant 3 : i32
    %31 = arith.index_cast %c3_i32 : i32 to index
    %c0_20 = arith.constant 0 : index
    %c0_21 = arith.constant 0 : index
    %32 = vector.load %arg6[%31, %c0_20, %c0_21] : memref<8x2x32xf32, #tpu.memory_space<vmem>>, vector<1x2x32xf32>
    %33 = vector.shape_cast %32 : vector<1x2x32xf32> to vector<2x32xf32>
    %cst_22 = arith.constant dense<0.000000e+00> : vector<2x32xf32>
    %34 = tpu.matmul %30, %11, %cst_22 {dimension_numbers = #tpu.dot_dimension_numbers<[1], [0], [0], [1], [0, 0, 1, 1], [], []>} : vector<2x32xf32>, vector<32x32xf32>, vector<2x32xf32> -> vector<2x32xf32>
    %35 = arith.addf %33, %34 : vector<2x32xf32>
    %36 = math.tanh %35 : vector<2x32xf32>
    %c4_i32 = arith.constant 4 : i32
    %37 = arith.index_cast %c4_i32 : i32 to index
    %c0_23 = arith.constant 0 : index
    %c0_24 = arith.constant 0 : index
    %38 = vector.load %arg6[%37, %c0_23, %c0_24] : memref<8x2x32xf32, #tpu.memory_space<vmem>>, vector<1x2x32xf32>
    %39 = vector.shape_cast %38 : vector<1x2x32xf32> to vector<2x32xf32>
    %cst_25 = arith.constant dense<0.000000e+00> : vector<2x32xf32>
    %40 = tpu.matmul %36, %11, %cst_25 {dimension_numbers = #tpu.dot_dimension_numbers<[1], [0], [0], [1], [0, 0, 1, 1], [], []>} : vector<2x32xf32>, vector<32x32xf32>, vector<2x32xf32> -> vector<2x32xf32>
    %41 = arith.addf %39, %40 : vector<2x32xf32>
    %42 = math.tanh %41 : vector<2x32xf32>
    %c5_i32 = arith.constant 5 : i32
    %43 = arith.index_cast %c5_i32 : i32 to index
    %c0_26 = arith.constant 0 : index
    %c0_27 = arith.constant 0 : index
    %44 = vector.load %arg6[%43, %c0_26, %c0_27] : memref<8x2x32xf32, #tpu.memory_space<vmem>>, vector<1x2x32xf32>
    %45 = vector.shape_cast %44 : vector<1x2x32xf32> to vector<2x32xf32>
    %cst_28 = arith.constant dense<0.000000e+00> : vector<2x32xf32>
    %46 = tpu.matmul %42, %11, %cst_28 {dimension_numbers = #tpu.dot_dimension_numbers<[1], [0], [0], [1], [0, 0, 1, 1], [], []>} : vector<2x32xf32>, vector<32x32xf32>, vector<2x32xf32> -> vector<2x32xf32>
    %47 = arith.addf %45, %46 : vector<2x32xf32>
    %48 = math.tanh %47 : vector<2x32xf32>
    %c6_i32 = arith.constant 6 : i32
    %49 = arith.index_cast %c6_i32 : i32 to index
    %c0_29 = arith.constant 0 : index
    %c0_30 = arith.constant 0 : index
    %50 = vector.load %arg6[%49, %c0_29, %c0_30] : memref<8x2x32xf32, #tpu.memory_space<vmem>>, vector<1x2x32xf32>
    %51 = vector.shape_cast %50 : vector<1x2x32xf32> to vector<2x32xf32>
    %cst_31 = arith.constant dense<0.000000e+00> : vector<2x32xf32>
    %52 = tpu.matmul %48, %11, %cst_31 {dimension_numbers = #tpu.dot_dimension_numbers<[1], [0], [0], [1], [0, 0, 1, 1], [], []>} : vector<2x32xf32>, vector<32x32xf32>, vector<2x32xf32> -> vector<2x32xf32>
    %53 = arith.addf %51, %52 : vector<2x32xf32>
    %54 = math.tanh %53 : vector<2x32xf32>
    %c7_i32 = arith.constant 7 : i32
    %55 = arith.index_cast %c7_i32 : i32 to index
    %c0_32 = arith.constant 0 : index
    %c0_33 = arith.constant 0 : index
    %56 = vector.load %arg6[%55, %c0_32, %c0_33] : memref<8x2x32xf32, #tpu.memory_space<vmem>>, vector<1x2x32xf32>
    %57 = vector.shape_cast %56 : vector<1x2x32xf32> to vector<2x32xf32>
    %cst_34 = arith.constant dense<0.000000e+00> : vector<2x32xf32>
    %58 = tpu.matmul %54, %11, %cst_34 {dimension_numbers = #tpu.dot_dimension_numbers<[1], [0], [0], [1], [0, 0, 1, 1], [], []>} : vector<2x32xf32>, vector<32x32xf32>, vector<2x32xf32> -> vector<2x32xf32>
    %59 = arith.addf %57, %58 : vector<2x32xf32>
    %60 = math.tanh %59 : vector<2x32xf32>
    %c8_i32 = arith.constant 8 : i32
    %c0_35 = arith.constant 0 : index
    %c0_36 = arith.constant 0 : index
    %61 = vector.load %arg5[%c0_35, %c0_36] : memref<2x32xf32, #tpu.memory_space<vmem>>, vector<2x32xf32>
    tpu.vector_store %arg5[%c0_35, %c0_36], %60 {strides = array<i32>} : memref<2x32xf32, #tpu.memory_space<vmem>>, vector<2x32xf32>,
    return
  }
  func.func @transform_0(%arg0: i32) -> (i32, i32, i32) {
    %c0_i32 = arith.constant 0 : i32
    %c0_i32_0 = arith.constant 0 : i32
    %c0_i32_1 = arith.constant 0 : i32
    %c0_i32_2 = arith.constant 0 : i32
    return %c0_i32, %c0_i32_0, %c0_i32_1 : i32, i32, i32
  }
  func.func @transform_1(%arg0: i32) -> (i32, i32) {
    %c0_i32 = arith.constant 0 : i32
    %c0_i32_0 = arith.constant 0 : i32
    %c0_i32_1 = arith.constant 0 : i32
    return %c0_i32, %c0_i32_0 : i32, i32
  }
  func.func @transform_2(%arg0: i32) -> (i32, i32) {
    %c0_i32 = arith.constant 0 : i32
    %c0_i32_0 = arith.constant 0 : i32
    %c0_i32_1 = arith.constant 0 : i32
    return %c0_i32, %c0_i32_0 : i32, i32
  }
  func.func @transform_3(%arg0: i32) -> (i32, i32) {
    %c0_i32 = arith.constant 0 : i32
    %c0_i32_0 = arith.constant 0 : i32
    %c0_i32_1 = arith.constant 0 : i32
    return %c0_i32, %c0_i32_0 : i32, i32
  }
  func.func @transform_4(%arg0: i32) -> (i32, i32) {
    %c0_i32 = arith.constant 0 : i32
    %c0_i32_0 = arith.constant 0 : i32
    %c0_i32_1 = arith.constant 0 : i32
    return %c0_i32, %c0_i32_0 : i32, i32
  }
}

</mosaic_0001>

<bundles_post_ra>
// kernel: rnn_predictor_forward.1
= control target key start
LH: loop header
LB: loop body
LE: loop exit
PB: predicated region body
PF: predicated region fallthrough
CT: control target
= control target key end

     0   :  { %9 = vsyncpa [#allocation4], 0  ;;  %s978_s15 = smov [#allocation3]   ;;  %s1144_s0 = inlined_call_operand.vmem [shape: f32[8,2,1], index: 0, kind: input, shape index: {}]   ;;  %s1145_s1 = inlined_call_operand.vmem [shape: f32[1,32], index: 1, kind: input, shape index: {}]   ;;  %s1146_s2 = inlined_call_operand.hbm [shape: f32[32,32], index: 2, kind: input, shape index: {}]   ;;  %s1147_s3 = inlined_call_operand.vmem [shape: f32[1,32], index: 3, kind: input, shape index: {}]   ;;  %s1148_s4 = inlined_call_operand.vmem [shape: f32[2,32], index: 4, kind: output, shape index: {}]  }
   0x1   :  { %s19_s16 = sshll.u32 %s978_s15, 4  ;;  %s954_s19 = scalar_lea.hbm %s1146_s2, 512  ;;  %s20_s16 = int_to_ptr.vmem [resolvable:$true] %s19_s16 }
   0x2   :  { %p955_p0 = scmp.ne.s32.totalorder %s1146_s2, %s954_s19  ;;  %p958_p1 = scmp.lt.u32.totalorder %s954_s19, %s1146_s2 }
   0x4   :  { %p960_p2 = pnand %p958_p1, %p955_p0 }
   0x6   :  { %963 = shalt.err (!%p960_p2)
}
   0x7   :  { %s964_s24 = scalar_lea.vmem %s20_s16, 512  ;;  %p969_p4 = scmp.lt.s32.totalorder %s20_s16, %s20_s16 }
   0x8   :  { %p965_p3 = scmp.ne.s32.totalorder %s20_s16, %s964_s24  ;;  %p970_p5 = scmp.lt.s32.totalorder %s964_s24, %s964_s24 }
   0xa   :  { %p971_p6 = por %p970_p5, %p969_p4 }
   0xc   :  { %p972_p7 = pnand %p971_p6, %p965_p3 }
   0xe   :  { %975 = shalt.err (!%p972_p7)
}
   0xf   :  { %s979_s25 = smov 128   ;;  %s980_s26 = smov 8  }
  0x10   :  { %25 = dma.hbm_to_vmem [thread:$0]  %s1146_s2, 512, %s20_s16, [#allocation4], %s979_s25, %s979_s25, %s980_s26  }
  0x11   :  { %976 = dma.done.wait [#allocation4], 512  }
  0x12   :  { %977 = vsyncadd [#allocation4], 4294966784  ;;  %v981_v0 = vmov 0.0|0.0   ;;  %vm982_vm0 = vmmov 0   ;;  %v983_v1 = vmov 0.0   ;;  %v984_v2 = vmov 0  }
  0x13   :  { %881 = vmatprep.subr.bf16.mxu0 %v981_v0  ;;  %801 = vmatprep.mubr.msk.f32.mxu0 %vm982_vm0, %v983_v1  ;;  %v118_v3 = vld [vmem:[#allocation3] sm:$0xff]  ;;  %v119_v4 = vld [vmem:[#allocation3 + $0x8] sm:$0xff]  ;;  %v120_v5 = vld [vmem:[#allocation3 + $0x10] sm:$0xff]  ;;  %vm109_vm1 = vcmask 254976   ;;  %vm123_vm2 = vcmask 261120  }
  0x14   :  { %936 = vset.pattern.permute.xlu0 %v984_v2  ;;  %887 = vmatprep.subr.bf16.mxu1 %v981_v0  ;;  %v1028_v6 = vpack.c.bf16 %v119_v4, %v118_v3  ;;  %v121_v7 = vld [vmem:[#allocation3 + $0x18] sm:$0xff]  ;;  %v31_v8 = vld [vmem:[%s1144_s0] sm:$0x3]  ;;  %v32_v10 = vld [vmem:[%s1144_s0 + $0x2] sm:$0x3] }
  0x15   :  { %812 = vmatprep.mubr.msk.f32.mxu1 %vm982_vm0, %v983_v1  ;;  %937 = vset.pattern.permute.xlu1 %v984_v2  ;;  %v1034_v9 = vpack.c.bf16 %v121_v7, %v120_v5  ;;  %v35_v11 = vld [vmem:[%s1144_s0 + $0x8] sm:$0x3]  ;;  %v37_v12 = vld [vmem:[%s1144_s0 + $0xc] sm:$0x3]  ;;  %v1062_v13 = vld [vmem:[%s1145_s1] ss:$0 sm:$0xff] }
  0x16   :  { %42 = vperm.xlu0 %936, %v31_v8   ;;  %883 = vmatpush3.bf16.msra.mxu0 %v1028_v6  ;;  %v1067_v14 = vld [vmem:[%s1147_s3] ss:$0 sm:$0xff]  ;;  %v33_v32 = vld [vmem:[%s1144_s0 + $0x4] sm:$0x3]  ;;  %v34_v33 = vld [vmem:[%s1144_s0 + $0x6] sm:$0x3] }
  0x17   :  { %889 = vmatpush3.bf16.msra.mxu1 %v1028_v6  ;;  %884 = vmatprep.subr.bf16.mxu0 %v981_v0  ;;  %v36_v34 = vld [vmem:[%s1144_s0 + $0xa] sm:$0x3]  ;;  %v38_v35 = vld [vmem:[%s1144_s0 + $0xe] sm:$0x3] }
  0x18   :  { %890 = vmatprep.subr.bf16.mxu1 %v981_v0  ;;  %52 = vperm.xlu1 %937, %v33_v32  }
  0x1a   :  { %47 = vperm.xlu0 %936, %v32_v10   ;;  %886 = vmatpush3.bf16.msra.mxu0 %v1034_v9 }
  0x1b   :  { %892 = vmatpush3.bf16.msra.mxu1 %v1034_v9  ;;  %893 = vmatprep.subr.bf16.mxu0 %v981_v0 }
  0x1c   :  { %899 = vmatprep.subr.bf16.mxu1 %v981_v0  ;;  %57 = vperm.xlu1 %937, %v34_v33  }
  0x1d   :  { %802 = vmatmul.mubr.f32.vlgmr.msra.gmra.mrb[0].mxu0 %v983_v1 }
  0x1e   :  { %62 = vperm.xlu0 %936, %v35_v11   ;;  %895 = vmatpush3.bf16.msra.mxu0 %v1028_v6 }
  0x1f   :  { %823 = vmatprep.mubr.msk.f32.mxu0 %vm982_vm0, %v983_v1  ;;  %896 = vmatprep.subr.bf16.mxu0 %v981_v0 }
  0x20   :  { %67 = vperm.xlu1 %937, %v36_v34  }
  0x22   :  { %72 = vperm.xlu0 %936, %v37_v12   ;;  %898 = vmatpush3.bf16.msra.mxu0 %v1034_v9 }
  0x23   :  { %905 = vmatprep.subr.bf16.mxu0 %v981_v0 }
  0x24   :  { %77 = vperm.xlu1 %937, %v38_v35  }
  0x95   :  { %v43_v15 = vpop.permute.xlu0 %42 }
  0x96   :  { %v86_v16 = vmul.f32 %v1062_v13, %v43_v15 }
  0x97   :  { %v53_v41 = vpop.permute.xlu1 %52 }
  0x98   :  { %v101_v17 = vadd.f32 %v1067_v14, %v86_v16  ;;  %v88_v42 = vmul.f32 %v1062_v13, %v53_v41 }
  0x99   :  { %v48_v18 = vpop.permute.xlu0 %47 }
  0x9a   :  { %110 = vst.msk [vmem:[#allocation2] sm:$0x3] %vm109_vm1, %v101_v17  ;;  %v87_v19 = vmul.f32 %v1062_v13, %v48_v18  ;;  %v103_v43 = vadd.f32 %v1067_v14, %v88_v42 }
  0x9b   :  { %v58_v44 = vpop.permute.xlu1 %57 }
  0x9c   :  { %v102_v20 = vadd.f32 %v1067_v14, %v87_v19  ;;  %112 = vst.msk [vmem:[#allocation2 + $0x4] sm:$0x3] %vm109_vm1, %v103_v43  ;;  %v89_v45 = vmul.f32 %v1062_v13, %v58_v44 }
  0x9d   :  { %v63_v21 = vpop.permute.xlu0 %62 }
  0x9e   :  { %111 = vst.msk [vmem:[#allocation2 + $0x2] sm:$0x3] %vm109_vm1, %v102_v20  ;;  %v90_v22 = vmul.f32 %v1062_v13, %v63_v21  ;;  %v104_v46 = vadd.f32 %v1067_v14, %v89_v45 }
  0x9f   :  { %v68_v47 = vpop.permute.xlu1 %67 }
  0xa0   :  { %v105_v23 = vadd.f32 %v1067_v14, %v90_v22  ;;  %113 = vst.msk [vmem:[#allocation2 + $0x6] sm:$0x3] %vm109_vm1, %v104_v46  ;;  %v91_v48 = vmul.f32 %v1062_v13, %v68_v47 }
  0xa1   :  { %v73_v24 = vpop.permute.xlu0 %72  ;;  %v122_v27 = vld [vmem:[#allocation2] sm:$0x3] }
  0xa2   :  { %114 = vst.msk [vmem:[#allocation2 + $0x8] sm:$0x3] %vm109_vm1, %v105_v23  ;;  %v92_v25 = vmul.f32 %v1062_v13, %v73_v24  ;;  %v106_v49 = vadd.f32 %v1067_v14, %v91_v48 }
  0xa3   :  { %v78_v50 = vpop.permute.xlu1 %77  ;;  %v277_v53 = vld [vmem:[#allocation2 + $0x4] sm:$0x3] }
  0xa4   :  { %v107_v26 = vadd.f32 %v1067_v14, %v92_v25  ;;  %115 = vst.msk [vmem:[#allocation2 + $0xa] sm:$0x3] %vm109_vm1, %v106_v49  ;;  %v93_v51 = vmul.f32 %v1062_v13, %v78_v50 }
  0xa5   :  { %v200_v36 = vld [vmem:[#allocation2 + $0x2] sm:$0x3] }
  0xa6   :  { %116 = vst.msk [vmem:[#allocation2 + $0xc] sm:$0x3] %vm109_vm1, %v107_v26  ;;  %v108_v52 = vadd.f32 %v1067_v14, %v93_v51 }
  0xa7   :  { %v354_v58 = vld [vmem:[#allocation2 + $0x6] sm:$0x3] }
  0xa8   :  { %117 = vst.msk [vmem:[#allocation2 + $0xe] sm:$0x3] %vm109_vm1, %v108_v52 }
  0xa9   :  { %v431_v63 = vld [vmem:[#allocation2 + $0x8] sm:$0x3] }
  0xab   :  { %v508_v7 = vld [vmem:[#allocation2 + $0xa] sm:$0x3] }
  0xad   :  { %v585_v13 = vld [vmem:[#allocation2 + $0xc] sm:$0x3] }
  0xf0   :  { %v193_v28 = vpop.f32.mrb[0].mxu0 }
  0xf1   :  { %v197_v29 = vadd.f32 %v193_v28, %v122_v27  ;;  %v803_v30 = vpop.f32.mrb[1].mxu0 }
  0xf3   :  { %938 = vtanh.f32 %v197_v29 }
  0xfd   :  { %v939_v31 = vpop.eup %938 }
  0xfe   :  { %813 = vmatmul.mubr.msk.f32.vlgmr.msra.gmra.mrb[0].mxu1 %vm123_vm2, %v939_v31 }
  0xff   :  { %901 = vmatpush3.bf16.msra.mxu1 %v1028_v6  ;;  %834 = vmatprep.mubr.msk.f32.mxu1 %vm982_vm0, %v983_v1 }
 0x100   :  { %902 = vmatprep.subr.bf16.mxu1 %v981_v0 }
 0x103   :  { %904 = vmatpush3.bf16.msra.mxu1 %v1034_v9 }
 0x104   :  { %911 = vmatprep.subr.bf16.mxu1 %v981_v0 }
 0x1d1   :  { %v270_v37 = vpop.f32.mrb[0].mxu1 }
 0x1d2   :  { %v274_v38 = vadd.f32 %v270_v37, %v200_v36  ;;  %v814_v39 = vpop.f32.mrb[1].mxu1 }
 0x1d4   :  { %940 = vtanh.f32 %v274_v38 }
 0x1de   :  { %v941_v40 = vpop.eup %940 }
 0x1df   :  { %824 = vmatmul.mubr.msk.f32.vlgmr.msra.gmra.mrb[2].mxu0 %vm123_vm2, %v941_v40 }
 0x1e0   :  { %907 = vmatpush3.bf16.msra.mxu0 %v1028_v6  ;;  %845 = vmatprep.mubr.msk.f32.mxu0 %vm982_vm0, %v983_v1 }
 0x1e1   :  { %908 = vmatprep.subr.bf16.mxu0 %v981_v0 }
 0x1e4   :  { %910 = vmatpush3.bf16.msra.mxu0 %v1034_v9 }
 0x1e5   :  { %917 = vmatprep.subr.bf16.mxu0 %v981_v0 }
 0x2b2   :  { %v347_v54 = vpop.f32.mrb[2].mxu0 }
 0x2b3   :  { %v351_v55 = vadd.f32 %v347_v54, %v277_v53  ;;  %v825_v56 = vpop.f32.mrb[3].mxu0 }
 0x2b5   :  { %942 = vtanh.f32 %v351_v55 }
 0x2bf   :  { %v943_v57 = vpop.eup %942 }
 0x2c0   :  { %835 = vmatmul.mubr.msk.f32.vlgmr.msra.gmra.mrb[2].mxu1 %vm123_vm2, %v943_v57 }
 0x2c1   :  { %913 = vmatpush3.bf16.msra.mxu1 %v1028_v6  ;;  %856 = vmatprep.mubr.msk.f32.mxu1 %vm982_vm0, %v983_v1 }
 0x2c2   :  { %914 = vmatprep.subr.bf16.mxu1 %v981_v0 }
 0x2c5   :  { %916 = vmatpush3.bf16.msra.mxu1 %v1034_v9 }
 0x2c6   :  { %923 = vmatprep.subr.bf16.mxu1 %v981_v0 }
 0x393   :  { %v424_v59 = vpop.f32.mrb[2].mxu1 }
 0x394   :  { %v428_v60 = vadd.f32 %v424_v59, %v354_v58  ;;  %v836_v61 = vpop.f32.mrb[3].mxu1 }
 0x396   :  { %944 = vtanh.f32 %v428_v60 }
 0x3a0   :  { %v945_v62 = vpop.eup %944 }
 0x3a1   :  { %846 = vmatmul.mubr.msk.f32.vlgmr.msra.gmra.mrb[4].mxu0 %vm123_vm2, %v945_v62 }
 0x3a2   :  { %919 = vmatpush3.bf16.msra.mxu0 %v1028_v6  ;;  %867 = vmatprep.mubr.msk.f32.mxu0 %vm982_vm0, %v983_v1 }
 0x3a3   :  { %920 = vmatprep.subr.bf16.mxu0 %v981_v0 }
 0x3a6   :  { %922 = vmatpush3.bf16.msra.mxu0 %v1034_v9 }
 0x474   :  { %v501_v2 = vpop.f32.mrb[4].mxu0 }
 0x475   :  { %v505_v3 = vadd.f32 %v501_v2, %v431_v63  ;;  %v847_v4 = vpop.f32.mrb[5].mxu0 }
 0x477   :  { %946 = vtanh.f32 %v505_v3 }
 0x481   :  { %v947_v5 = vpop.eup %946 }
 0x482   :  { %857 = vmatmul.mubr.msk.f32.vlgmr.msra.gmra.mrb[4].mxu1 %vm123_vm2, %v947_v5 }
 0x483   :  { %925 = vmatpush3.bf16.msra.mxu1 %v1028_v6  ;;  %878 = vmatprep.mubr.msk.f32.mxu1 %vm982_vm0, %v983_v1  ;;  %v662_v1 = vld [vmem:[#allocation2 + $0xe] sm:$0x3] }
 0x484   :  { %926 = vmatprep.subr.bf16.mxu1 %v981_v0 }
 0x487   :  { %928 = vmatpush3.bf16.msra.mxu1 %v1034_v9 }
 0x555   :  { %v578_v8 = vpop.f32.mrb[4].mxu1 }
 0x556   :  { %v582_v10 = vadd.f32 %v578_v8, %v508_v7  ;;  %v858_v11 = vpop.f32.mrb[5].mxu1 }
 0x558   :  { %948 = vtanh.f32 %v582_v10 }
 0x562   :  { %v949_v12 = vpop.eup %948 }
 0x563   :  { %868 = vmatmul.mubr.msk.f32.vlgmr.msra.gmra.mrb[6].mxu0 %vm123_vm2, %v949_v12 }
 0x636   :  { %v655_v14 = vpop.f32.mrb[6].mxu0 }
 0x637   :  { %v659_v15 = vadd.f32 %v655_v14, %v585_v13  ;;  %v869_v16 = vpop.f32.mrb[7].mxu0 }
 0x639   :  { %950 = vtanh.f32 %v659_v15 }
 0x643   :  { %v951_v6 = vpop.eup %950 }
 0x644   :  { %879 = vmatmul.mubr.msk.f32.vlgmr.msra.gmra.mrb[6].mxu1 %vm123_vm2, %v951_v6 }
 0x717   :  { %v732_v0 = vpop.f32.mrb[6].mxu1 }
 0x718   :  { %v736_v17 = vadd.f32 %v732_v0, %v662_v1  ;;  %v880_v9 = vpop.f32.mrb[7].mxu1 }
 0x71a   :  { %952 = vtanh.f32 %v736_v17 }
 0x724   :  { %v953_v18 = vpop.eup %952 }
 0x725   :  { %738 = vst.msk [vmem:[%s1148_s4] sm:$0x3] %vm109_vm1, %v953_v18 }
 0x726   :  { %743 = vsyncpa [#allocation4], 1 }

</bundles_post_ra>
